<compile_context>
chip_gen: v5e
topology: v5e:2x2
jax: 0.10.0
libtpu: 0.0.40
codegen_flags: <defaults>
</compile_context>

<pallas_src>
import jax
import jax.numpy as jnp
from jax.experimental import pallas as pl
from jax.experimental.pallas import tpu as pltpu


def _round_up(n, m):
    return ((n + m - 1) // m) * m


def _domain_classifier_kernel(x_ref, w1_ref, b1_ref, w2_ref, b2_ref, out_ref):
    # GradReverse is the identity in forward; `constant` never enters here.

    # fc1 + ReLU: MXU matmul with f32 accumulation, VPU bias/ReLU.
    h = jnp.dot(x_ref[...], w1_ref[...], preferred_element_type=jnp.float32)
    h = jnp.maximum(h + b1_ref[...], 0.0)

    # fc2 over the lane-dense (padded-to-128) class axis.
    logits = jnp.dot(h.astype(w2_ref.dtype), w2_ref[...],
                     preferred_element_type=jnp.float32)
    logits = logits + b2_ref[...]          # pad lanes carry -inf bias

    # log_softmax over the class axis, numerically stable.  Pad lanes hold
    # -inf: they never win the max and contribute exp(-inf)=0 to the sum,
    # so the real-class results are identical to the unpadded computation.
    m = jnp.max(logits, axis=-1, keepdims=True)
    shifted = logits - m
    lse = jnp.log(jnp.sum(jnp.exp(shifted), axis=-1, keepdims=True))
    out_ref[...] = (shifted - lse).astype(out_ref.dtype)


def resnet_domain_classifier(x, constant, w1, b1, w2, b2, *, tm=256):
    """Forward pass of Resnet_Domain_classifier.

    x        : (B, F) features (f32 or bf16)
    constant : scalar GRL coefficient (forward-pass no-op; kept for API parity)
    w1       : (F, H), b1: (H,)
    w2       : (H, C), b2: (C,)
    returns  : (B, C) f32 log-probabilities
    """
    del constant  # GRL is identity in forward
    B, F = x.shape
    H = w1.shape[1]
    C = w2.shape[1]

    # ---- Lane-dense class axis: pad C up to a multiple of 128. ----
    C_pad = _round_up(C, 128)
    w2_pad = jnp.zeros((H, C_pad), w2.dtype).at[:, :C].set(w2)
    b2_pad = (jnp.full((1, C_pad), -jnp.inf, jnp.float32)
              .at[0, :C].set(b2.astype(jnp.float32)))
    b1_2d = b1.reshape(1, H).astype(jnp.float32)

    # ---- Batch tiling: TM multiple of 8 (sublane); pad B up to grid*TM. ----
    tm = _round_up(max(tm, 8), 8)
    tm_eff = min(tm, _round_up(B, 8))
    B_pad = _round_up(B, tm_eff)
    x_pad = x if B_pad == B else jnp.pad(x, ((0, B_pad - B), (0, 0)))
    grid = (pl.cdiv(B_pad, tm_eff),)

    itemsize_x = jnp.dtype(x.dtype).itemsize
    itemsize_w1 = jnp.dtype(w1.dtype).itemsize
    itemsize_w2 = jnp.dtype(w2.dtype).itemsize

    # VMEM budget: double-buffered x/out tiles + resident weights (+ margin).
    # Sized to stay well under v7x's 64 MiB VMEM while still allowing big
    # batch tiles on v5e/v6e.
    vmem_need = (2 * tm_eff * F * itemsize_x          # x tile, double-buffered
                 + 2 * F * H * itemsize_w1            # w1 (default 2 buffers)
                 + 2 * H * C_pad * itemsize_w2        # w2_pad
                 + 2 * (H + C_pad) * 4                # biases
                 + 2 * tm_eff * C_pad * 4)            # out tile
    vmem_limit = int(min(max(2 * vmem_need, 16 * 1024 * 1024),
                         48 * 1024 * 1024))

    cost = pl.CostEstimate(
        flops=2 * B_pad * F * H + 2 * B_pad * H * C_pad,
        transcendentals=2 * B_pad * C_pad,            # exp + log
        bytes_accessed=int(x_pad.size * itemsize_x
                           + w1.size * itemsize_w1
                           + w2_pad.size * itemsize_w2
                           + (H + C_pad) * 4
                           + B_pad * C_pad * 4),
    )

    out = pl.pallas_call(
        _domain_classifier_kernel,
        out_shape=jax.ShapeDtypeStruct((B_pad, C_pad), jnp.float32),
        grid=grid,
        in_specs=[
            pl.BlockSpec((tm_eff, F), lambda i: (i, 0)),   # x: streamed per tile
            pl.BlockSpec((F, H), lambda i: (0, 0)),        # w1: VMEM-resident
            pl.BlockSpec((1, H), lambda i: (0, 0)),        # b1
            pl.BlockSpec((H, C_pad), lambda i: (0, 0)),    # w2 (padded)
            pl.BlockSpec((1, C_pad), lambda i: (0, 0)),    # b2 (padded)
        ],
        out_specs=pl.BlockSpec((tm_eff, C_pad), lambda i: (i, 0)),
        compiler_params=pltpu.CompilerParams(
            dimension_semantics=("parallel",),             # megacore on v7x
            vmem_limit_bytes=vmem_limit,
        ),
        cost_estimate=cost,
    )(x_pad, w1, b1_2d, w2_pad, b2_pad)

    # Drop batch padding and the -inf pad lanes.
    return out[:B, :C]


def _reference(x, w1, b1, w2, b2):
    h = jnp.maximum(x @ w1 + b1, 0.0)
    return jax.nn.log_softmax(h @ w2 + b2, axis=1)


if __name__ == "__main__":
    # TODO(synk): GradReverse only affects backward (gradient scaling by
    # -constant); forward is identity, so it has no kernel-side equivalent.

    key = jax.random.PRNGKey(0)
    kx, k1, k2, k3, k4, kx2 = jax.random.split(key, 6)

    # Small shapes consistent with the module: flattened ResNet features of
    # dim 256, hidden 128, 2 domain classes.
    F, H, C = 256, 128, 2
    w1 = jax.random.uniform(k1, (F, H), jnp.float32, -1.0, 1.0) / jnp.sqrt(F)
    b1 = jax.random.uniform(k2, (H,), jnp.float32, -1.0, 1.0) / jnp.sqrt(F)
    w2 = jax.random.uniform(k3, (H, C), jnp.float32, -1.0, 1.0) / jnp.sqrt(H)
    b2 = jax.random.uniform(k4, (C,), jnp.float32, -1.0, 1.0) / jnp.sqrt(H)
    constant = jnp.float32(0.5)  # GRL lambda; forward-pass no-op

    # Case 1: single-tile batch (B=8).
    B1 = 8
    x1 = jax.random.normal(kx, (B1, F), dtype=jnp.float32)
    out1 = jax.block_until_ready(
        resnet_domain_classifier(x1, constant, w1, b1, w2, b2))
    ref1 = _reference(x1, w1, b1, w2, b2)
    assert out1.shape == (B1, C)
    assert jnp.allclose(out1, ref1, atol=1e-5, rtol=1e-5)

    # Case 2: multi-tile batch with padding (B=45, TM=16 -> grid=3, pad to 48).
    B2 = 45
    x2 = jax.random.normal(kx2, (B2, F), dtype=jnp.float32)
    out2 = jax.block_until_ready(
        resnet_domain_classifier(x2, constant, w1, b1, w2, b2, tm=16))
    ref2 = _reference(x2, w1, b1, w2, b2)
    assert out2.shape == (B2, C)
    assert jnp.allclose(out2, ref2, atol=1e-5, rtol=1e-5)
    assert jnp.all(jnp.isfinite(out2))

    print("KERNEL_OK")
</pallas_src>

<mosaic_0001>
module attributes {stable_mosaic.version = 11 : i64} {
  func.func @_domain_classifier_kernel(%arg0: i32, %arg1: memref<8x256xf32, #tpu.memory_space<vmem>>, %arg2: memref<256x128xf32, #tpu.memory_space<vmem>>, %arg3: memref<1x128xf32, #tpu.memory_space<vmem>>, %arg4: memref<128x128xf32, #tpu.memory_space<vmem>>, %arg5: memref<1x128xf32, #tpu.memory_space<vmem>>, %arg6: memref<8x128xf32, #tpu.memory_space<vmem>>) attributes {dimension_semantics = [#tpu.dimension_semantics<parallel>], iteration_bounds = array<i64: 1>, scalar_prefetch = 0 : i64, scratch_operands = 0 : i64, tpu.core_type = #tpu.core_type<tc>, window_params = [{transform_indices = @transform_0, window_bounds = array<i64: 8, 256>}, {pipeline_mode = #tpu.pipeline_mode<synchronous>, transform_indices = @transform_1, window_bounds = array<i64: 256, 128>}, {pipeline_mode = #tpu.pipeline_mode<synchronous>, transform_indices = @transform_2, window_bounds = array<i64: 1, 128>}, {pipeline_mode = #tpu.pipeline_mode<synchronous>, transform_indices = @transform_3, window_bounds = array<i64: 128, 128>}, {pipeline_mode = #tpu.pipeline_mode<synchronous>, transform_indices = @transform_4, window_bounds = array<i64: 1, 128>}, {transform_indices = @transform_5, window_bounds = array<i64: 8, 128>}]} {
    %c0 = arith.constant 0 : index
    %c0_0 = arith.constant 0 : index
    %0 = vector.load %arg1[%c0, %c0_0] : memref<8x256xf32, #tpu.memory_space<vmem>>, vector<8x256xf32>
    %c0_1 = arith.constant 0 : index
    %c0_2 = arith.constant 0 : index
    %1 = vector.load %arg2[%c0_1, %c0_2] : memref<256x128xf32, #tpu.memory_space<vmem>>, vector<256x128xf32>
    %cst = arith.constant dense<0.000000e+00> : vector<8x128xf32>
    %2 = tpu.matmul %0, %1, %cst {dimension_numbers = #tpu.dot_dimension_numbers<[1], [0], [0], [1], [0, 0, 1, 1], [], []>} : vector<8x256xf32>, vector<256x128xf32>, vector<8x128xf32> -> vector<8x128xf32>
    %c0_3 = arith.constant 0 : index
    %c0_4 = arith.constant 0 : index
    %3 = vector.load %arg3[%c0_3, %c0_4] : memref<1x128xf32, #tpu.memory_space<vmem>>, vector<1x128xf32>
    %4 = vector.broadcast %3 : vector<1x128xf32> to vector<8x128xf32>
    %5 = arith.addf %2, %4 : vector<8x128xf32>
    %cst_5 = arith.constant 0.000000e+00 : f32
    %6 = vector.broadcast %cst_5 : f32 to vector<8x128xf32>
    %7 = arith.maximumf %5, %6 : vector<8x128xf32>
    %c0_6 = arith.constant 0 : index
    %c0_7 = arith.constant 0 : index
    %8 = vector.load %arg4[%c0_6, %c0_7] : memref<128x128xf32, #tpu.memory_space<vmem>>, vector<128x128xf32>
    %cst_8 = arith.constant dense<0.000000e+00> : vector<8x128xf32>
    %9 = tpu.matmul %7, %8, %cst_8 {dimension_numbers = #tpu.dot_dimension_numbers<[1], [0], [0], [1], [0, 0, 1, 1], [], []>} : vector<8x128xf32>, vector<128x128xf32>, vector<8x128xf32> -> vector<8x128xf32>
    %c0_9 = arith.constant 0 : index
    %c0_10 = arith.constant 0 : index
    %10 = vector.load %arg5[%c0_9, %c0_10] : memref<1x128xf32, #tpu.memory_space<vmem>>, vector<1x128xf32>
    %11 = vector.broadcast %10 : vector<1x128xf32> to vector<8x128xf32>
    %12 = arith.addf %9, %11 : vector<8x128xf32>
    %cst_11 = arith.constant dense<0xFF800000> : vector<8xf32>
    %13 = vector.multi_reduction <maximumf>, %12, %cst_11 [1] : vector<8x128xf32> to vector<8xf32>
    %14 = vector.shape_cast %13 : vector<8xf32> to vector<8x1xf32>
    %15 = vector.broadcast %14 : vector<8x1xf32> to vector<8x128xf32>
    %16 = arith.subf %12, %15 : vector<8x128xf32>
    %17 = math.exp %16 : vector<8x128xf32>
    %cst_12 = arith.constant dense<0.000000e+00> : vector<8xf32>
    %18 = vector.multi_reduction <add>, %17, %cst_12 [1] : vector<8x128xf32> to vector<8xf32>
    %19 = vector.shape_cast %18 : vector<8xf32> to vector<8x1xf32>
    %20 = math.log %19 : vector<8x1xf32>
    %21 = vector.broadcast %20 : vector<8x1xf32> to vector<8x128xf32>
    %22 = arith.subf %16, %21 : vector<8x128xf32>
    %c0_13 = arith.constant 0 : index
    %c0_14 = arith.constant 0 : index
    %23 = vector.load %arg6[%c0_13, %c0_14] : memref<8x128xf32, #tpu.memory_space<vmem>>, vector<8x128xf32>
    tpu.vector_store %arg6[%c0_13, %c0_14], %22 {strides = array<i32>} : memref<8x128xf32, #tpu.memory_space<vmem>>, vector<8x128xf32>,
    return
  }
  func.func @transform_0(%arg0: i32) -> (i32, i32) {
    %c0_i32 = arith.constant 0 : i32
    %c0_i32_0 = arith.constant 0 : i32
    return %arg0, %c0_i32 : i32, i32
  }
  func.func @transform_1(%arg0: i32) -> (i32, i32) {
    %c0_i32 = arith.constant 0 : i32
    %c0_i32_0 = arith.constant 0 : i32
    %c0_i32_1 = arith.constant 0 : i32
    return %c0_i32, %c0_i32_0 : i32, i32
  }
  func.func @transform_2(%arg0: i32) -> (i32, i32) {
    %c0_i32 = arith.constant 0 : i32
    %c0_i32_0 = arith.constant 0 : i32
    %c0_i32_1 = arith.constant 0 : i32
    return %c0_i32, %c0_i32_0 : i32, i32
  }
  func.func @transform_3(%arg0: i32) -> (i32, i32) {
    %c0_i32 = arith.constant 0 : i32
    %c0_i32_0 = arith.constant 0 : i32
    %c0_i32_1 = arith.constant 0 : i32
    return %c0_i32, %c0_i32_0 : i32, i32
  }
  func.func @transform_4(%arg0: i32) -> (i32, i32) {
    %c0_i32 = arith.constant 0 : i32
    %c0_i32_0 = arith.constant 0 : i32
    %c0_i32_1 = arith.constant 0 : i32
    return %c0_i32, %c0_i32_0 : i32, i32
  }
  func.func @transform_5(%arg0: i32) -> (i32, i32) {
    %c0_i32 = arith.constant 0 : i32
    %c0_i32_0 = arith.constant 0 : i32
    return %arg0, %c0_i32 : i32, i32
  }
}

</mosaic_0001>

<bundles_post_ra>
// kernel: tpu_custom_call.1
= control target key start
LH: loop header
LB: loop body
LE: loop exit
PB: predicated region body
PF: predicated region fallthrough
CT: control target
= control target key end

     0   :  { %10 = vsyncpa [#allocation3], 0  ;;  %s382_s0 = inlined_call_operand.hbm [shape: f32[8,256], index: 0, kind: input, shape index: {}]   ;;  %s383_s1 = inlined_call_operand.hbm [shape: f32[256,128], index: 1, kind: input, shape index: {}]   ;;  %s384_s2 = inlined_call_operand.vmem [shape: f32[1,128], index: 2, kind: input, shape index: {}]   ;;  %s385_s3 = inlined_call_operand.hbm [shape: f32[128,128], index: 3, kind: input, shape index: {}]   ;;  %s386_s4 = inlined_call_operand.vmem [shape: f32[1,128], index: 4, kind: input, shape index: {}]   ;;  %s387_s5 = inlined_call_operand.hbm [shape: f32[8,128], index: 5, kind: output, shape index: {}]  }
   0x1   :  { %11 = vsyncpa [#allocation6], 0  ;;  %s28_s20 = sshll.u32 %s383_s1, 4  ;;  %s29_s20 = int_to_ptr.hbm [resolvable:$true] %s28_s20 }
   0x2   :  { %12 = vsyncpa [#allocation4], 0  ;;  %s328_s21 = smov [#allocation5]   ;;  %s18_s25 = sshll.u32 %s382_s0, 4  ;;  %s19_s25 = int_to_ptr.hbm [resolvable:$true] %s18_s25 }
   0x3   :  { %s30_s22 = sshll.u32 %s328_s21, 4  ;;  %s329_s26 = smov 128   ;;  %s31_s22 = int_to_ptr.vmem [resolvable:$true] %s30_s22 }
   0x4   :  { %s330_s27 = smov 8   ;;  %s331_s28 = smov [#allocation2]  }
   0x5   :  { %36 = dma.hbm_to_vmem [thread:$0]  %s29_s20, 4096, %s31_s22, [#allocation6], %s329_s26, %s329_s26, %s330_s27  }
   0x6   :  { %s20_s29 = sshll.u32 %s331_s28, 4  ;;  %s43_s7 = sshll.u32 %s385_s3, 4  ;;  %s21_s29 = int_to_ptr.vmem [resolvable:$true] %s20_s29  ;;  %s44_s7 = int_to_ptr.hbm [resolvable:$true] %s43_s7 }
   0x7   :  { %23 = dma.hbm_to_vmem [thread:$0]  %s19_s25, 256, %s21_s29, [#allocation3]  }
   0x8   :  { %s332_s1 = smov [#allocation7]  }
   0x9   :  { %s45_s8 = sshll.u32 %s332_s1, 4  ;;  %s46_s8 = int_to_ptr.vmem [resolvable:$true] %s45_s8 }
   0xa   :  { %51 = dma.hbm_to_vmem [thread:$0]  %s44_s7, 2048, %s46_s8, [#allocation6], %s329_s26, %s329_s26, %s330_s27  }
   0xb   :  { %322 = dma.done.wait [#allocation3], 256  }
   0xc   :  { %323 = vsyncadd [#allocation3], 4294967040 }
   0xd   :  { %324 = dma.done.wait [#allocation6], 6144  }
   0xe   :  { %325 = vsyncadd [#allocation6], 4294961152  ;;  %v83_v0 = vld [vmem:[#allocation5 + $0x78] sm:$0xff]  ;;  %v82_v1 = vld [vmem:[#allocation5 + $0x70] sm:$0xff]  ;;  %s203_s14 = sshll.u32 %s387_s5, 4  ;;  %s204_s14 = int_to_ptr.hbm [resolvable:$true] %s203_s14 }
   0xf   :  { %v99_v2 = vld [vmem:[#allocation5 + $0xf8] sm:$0xff]  ;;  %104 = vmatpush.msra.mxu0 %v83_v0  ;;  %v98_v3 = vld [vmem:[#allocation5 + $0xf0] sm:$0xff]  ;;  %v81_v4 = vld [vmem:[#allocation5 + $0x68] sm:$0xff] }
  0x10   :  { %124 = vmatpush.msra.mxu1 %v99_v2  ;;  %v97_v5 = vld [vmem:[#allocation5 + $0xe8] sm:$0xff]  ;;  %v80_v6 = vld [vmem:[#allocation5 + $0x60] sm:$0xff]  ;;  %v79_v8 = vld [vmem:[#allocation5 + $0x58] sm:$0xff] }
  0x11   :  { %105 = vmatpush.msra.mxu0 %v82_v1  ;;  %v96_v7 = vld [vmem:[#allocation5 + $0xe0] sm:$0xff]  ;;  %v95_v9 = vld [vmem:[#allocation5 + $0xd8] sm:$0xff]  ;;  %v78_v10 = vld [vmem:[#allocation5 + $0x50] sm:$0xff] }
  0x12   :  { %125 = vmatpush.msra.mxu1 %v98_v3  ;;  %v94_v11 = vld [vmem:[#allocation5 + $0xd0] sm:$0xff]  ;;  %v77_v12 = vld [vmem:[#allocation5 + $0x48] sm:$0xff]  ;;  %v160_v14 = vld [vmem:[#allocation7 + $0x78] sm:$0xff] }
  0x13   :  { %106 = vmatpush.msra.mxu0 %v81_v4  ;;  %v93_v13 = vld [vmem:[#allocation5 + $0xc8] sm:$0xff]  ;;  %v159_v15 = vld [vmem:[#allocation7 + $0x70] sm:$0xff]  ;;  %v76_v16 = vld [vmem:[#allocation5 + $0x40] sm:$0xff]  ;;  %165 = vmatpush.msra.mxu2 %v160_v14 }
  0x14   :  { %126 = vmatpush.msra.mxu1 %v97_v5  ;;  %v92_v17 = vld [vmem:[#allocation5 + $0xc0] sm:$0xff]  ;;  %v158_v18 = vld [vmem:[#allocation7 + $0x68] sm:$0xff]  ;;  %v75_v19 = vld [vmem:[#allocation5 + $0x38] sm:$0xff] }
  0x15   :  { %107 = vmatpush.msra.mxu0 %v80_v6  ;;  %v91_v20 = vld [vmem:[#allocation5 + $0xb8] sm:$0xff]  ;;  %166 = vmatpush.msra.mxu2 %v159_v15  ;;  %v157_v21 = vld [vmem:[#allocation7 + $0x60] sm:$0xff]  ;;  %v74_v22 = vld [vmem:[#allocation5 + $0x30] sm:$0xff] }
  0x16   :  { %127 = vmatpush.msra.mxu1 %v96_v7  ;;  %v90_v23 = vld [vmem:[#allocation5 + $0xb0] sm:$0xff]  ;;  %v156_v24 = vld [vmem:[#allocation7 + $0x58] sm:$0xff]  ;;  %v73_v25 = vld [vmem:[#allocation5 + $0x28] sm:$0xff] }
  0x17   :  { %108 = vmatpush.msra.mxu0 %v79_v8  ;;  %167 = vmatpush.msra.mxu2 %v158_v18  ;;  %v89_v26 = vld [vmem:[#allocation5 + $0xa8] sm:$0xff]  ;;  %v155_v27 = vld [vmem:[#allocation7 + $0x50] sm:$0xff]  ;;  %v72_v28 = vld [vmem:[#allocation5 + $0x20] sm:$0xff] }
  0x18   :  { %128 = vmatpush.msra.mxu1 %v95_v9  ;;  %v88_v29 = vld [vmem:[#allocation5 + $0xa0] sm:$0xff]  ;;  %v154_v30 = vld [vmem:[#allocation7 + $0x48] sm:$0xff]  ;;  %v71_v31 = vld [vmem:[#allocation5 + $0x18] sm:$0xff] }
  0x19   :  { %109 = vmatpush.msra.mxu0 %v78_v10  ;;  %168 = vmatpush.msra.mxu2 %v157_v21  ;;  %v87_v32 = vld [vmem:[#allocation5 + $0x98] sm:$0xff]  ;;  %v153_v33 = vld [vmem:[#allocation7 + $0x40] sm:$0xff]  ;;  %v70_v34 = vld [vmem:[#allocation5 + $0x10] sm:$0xff] }
  0x1a   :  { %129 = vmatpush.msra.mxu1 %v94_v11  ;;  %v86_v35 = vld [vmem:[#allocation5 + $0x90] sm:$0xff]  ;;  %v152_v36 = vld [vmem:[#allocation7 + $0x38] sm:$0xff]  ;;  %v69_v37 = vld [vmem:[#allocation5 + $0x8] sm:$0xff] }
  0x1b   :  { %110 = vmatpush.msra.mxu0 %v77_v12  ;;  %169 = vmatpush.msra.mxu2 %v156_v24  ;;  %v85_v38 = vld [vmem:[#allocation5 + $0x88] sm:$0xff]  ;;  %v151_v39 = vld [vmem:[#allocation7 + $0x30] sm:$0xff]  ;;  %v68_v40 = vld [vmem:[#allocation5] sm:$0xff] }
  0x1c   :  { %130 = vmatpush.msra.mxu1 %v93_v13  ;;  %v84_v41 = vld [vmem:[#allocation5 + $0x80] sm:$0xff]  ;;  %v66_v42 = vld [vmem:[#allocation2] sm:$0xff]  ;;  %v67_v43 = vld [vmem:[#allocation2 + $0x8] sm:$0xff] }
  0x1d   :  { %111 = vmatpush.msra.mxu0 %v76_v16  ;;  %170 = vmatpush.msra.mxu2 %v155_v27  ;;  %v150_v44 = vld [vmem:[#allocation7 + $0x28] sm:$0xff]  ;;  %v149_v45 = vld [vmem:[#allocation7 + $0x20] sm:$0xff]  ;;  %v148_v46 = vld [vmem:[#allocation7 + $0x18] sm:$0xff] }
  0x1e   :  { %131 = vmatpush.msra.mxu1 %v92_v17  ;;  %v147_v47 = vld [vmem:[#allocation7 + $0x10] sm:$0xff]  ;;  %v146_v48 = vld [vmem:[#allocation7 + $0x8] sm:$0xff]  ;;  %v145_v49 = vld [vmem:[#allocation7] sm:$0xff] }
  0x1f   :  { %112 = vmatpush.msra.mxu0 %v75_v19  ;;  %171 = vmatpush.msra.mxu2 %v154_v30  ;;  %v220_v50 = vld [vmem:[%s384_s2] ss:$0 sm:$0xff]  ;;  %s333_s2 = smov [#allocation8]  }
  0x20   :  { %132 = vmatpush.msra.mxu1 %v91_v20  ;;  %v221_v56 = vld [vmem:[%s386_s4] ss:$0 sm:$0xff]  ;;  %s201_s11 = sshll.u32 %s333_s2, 4  ;;  %s202_s11 = int_to_ptr.vmem [resolvable:$true] %s201_s11 }
  0x21   :  { %113 = vmatpush.msra.mxu0 %v74_v22  ;;  %172 = vmatpush.msra.mxu2 %v153_v33 }
  0x22   :  { %133 = vmatpush.msra.mxu1 %v90_v23 }
  0x23   :  { %114 = vmatpush.msra.mxu0 %v73_v25  ;;  %173 = vmatpush.msra.mxu2 %v152_v36 }
  0x24   :  { %134 = vmatpush.msra.mxu1 %v89_v26 }
  0x25   :  { %115 = vmatpush.msra.mxu0 %v72_v28  ;;  %174 = vmatpush.msra.mxu2 %v151_v39 }
  0x26   :  { %135 = vmatpush.msra.mxu1 %v88_v29 }
  0x27   :  { %116 = vmatpush.msra.mxu0 %v71_v31  ;;  %175 = vmatpush.msra.mxu2 %v150_v44 }
  0x28   :  { %136 = vmatpush.msra.mxu1 %v87_v32 }
  0x29   :  { %117 = vmatpush.msra.mxu0 %v70_v34  ;;  %176 = vmatpush.msra.mxu2 %v149_v45 }
  0x2a   :  { %137 = vmatpush.msra.mxu1 %v86_v35 }
  0x2b   :  { %118 = vmatpush.msra.mxu0 %v69_v37  ;;  %177 = vmatpush.msra.mxu2 %v148_v46 }
  0x2c   :  { %138 = vmatpush.msra.mxu1 %v85_v38 }
  0x2d   :  { %119 = vmatpush.msra.mxu0 %v68_v40  ;;  %178 = vmatpush.msra.mxu2 %v147_v47 }
  0x2e   :  { %139 = vmatpush.msra.mxu1 %v84_v41  ;;  %120 = vmatmul.f32.vlgmr.msra.gmra.mxu0 %v66_v42 }
  0x2f   :  { %140 = vmatmul.f32.vlgmr.msra.gmra.mxu1 %v67_v43  ;;  %179 = vmatpush.msra.mxu2 %v146_v48 }
  0x31   :  { %180 = vmatpush.msra.mxu2 %v145_v49 }
  0xab   :  { %v121_v51 = vpop.f32.mrf.mxu0 }
  0xac   :  { %v141_v52 = vpop.f32.mrf.mxu1  ;;  %v122_v53 = vadd.f32 %v220_v50, %v121_v51 }
  0xae   :  { %v142_v54 = vadd.f32 %v141_v52, %v122_v53 }
  0xb0   :  { %v144_v55 = vmax.f32 %v142_v54, 0.0 }
  0xb2   :  { %181 = vmatmul.f32.vlgmr.msra.gmra.mxu2 %v144_v55 }
 0x135   :  { %v182_v57 = vpop.f32.mrf.mxu2 }
 0x136   :  { %v183_v58 = vadd.f32 %v221_v56, %v182_v57 }
 0x138   :  { %185 = vmax.xlane.f32.xlu0 %v183_v58 }
 0x1ab   :  { %v186_v59 = vpop.xlane.xlu0 %185 }
 0x1ac   :  { %v187_v60 = vsub.f32 %v183_v58, %v186_v59 }
 0x1ae   :  { %v188_v61 = vmul.f32 1.442695, %v187_v60 }
 0x1b0   :  { %222 = vpow2.f32 %v188_v61 }
 0x1b6   :  { %v223_v62 = vpop.eup %222 }
 0x1b7   :  { %190 = vadd.xlane.f32.xlu0 %v223_v62 }
 0x22a   :  { %v191_v63 = vpop.xlane.xlu0 %190 }
 0x22b   :  { %224 = vlog2.f32 %v191_v63 }
 0x231   :  { %v225_v0 = vpop.eup %224 }
 0x232   :  { %v193_v1 = vmul.f32 0.6931472, %v225_v0 }
 0x234   :  { %v194_v2 = vsub.f32 %v187_v60, %v193_v1 }
 0x236   :  { %195 = vst [vmem:[#allocation8] sm:$0xff] %v194_v2 }
 0x237   :  { %206 = dma.vmem_to_hbm [thread:$0]  %s202_s11, 128, %s204_s14, [#allocation4]  }
 0x238   :  { %326 = dma.done.wait [#allocation4], 128  }
 0x239   :  { %327 = vsyncadd [#allocation4], 4294967168 }
 0x23a   :  { %211 = vsyncpa [#allocation3], 1 }
 0x23b   :  { %212 = vsyncpa [#allocation6], 1 }
 0x23c   :  { %213 = vsyncpa [#allocation4], 1 }

</bundles_post_ra>
